<compile_context>
chip_gen: v6e
topology: v6e:2x2x1
jax: 0.10.0
libtpu: 0.0.40
codegen_flags: <defaults>
</compile_context>

<pallas_src>
import functools

import jax
import jax.numpy as jnp
from jax import lax
from jax.experimental import pallas as pl
from jax.experimental.pallas import tpu as pltpu

_MIX1 = 0x9E3779B9
_MIX2 = 0x85EBCA6B
_MIX3 = 0xC2B2AE35


def _threshold_u32(drop: float) -> int:
    return min(int(round(drop * 4294967296.0)), 4294967295)


def _linear_block_kernel(seed_ref, x_ref, w_ref, b_ref, o_ref, *, drop: float):
    """seed_ref: SMEM (1,) int32.  x:(bm,K)  w:(N_pad,K)  b:(1,N_pad)  o:(bm,N_pad)."""
    if drop >= 1.0:
        # Everything is dropped -> output is just the bias.
        o_ref[...] = jnp.broadcast_to(
            b_ref[...].astype(jnp.float32), o_ref.shape).astype(o_ref.dtype)
        return

    x = x_ref[...]
    bm, K = x_ref.shape

    if drop > 0.0:  # static python branch
        # Global element index (independent of batch tiling).
        rows = lax.broadcasted_iota(jnp.int32, (bm, K), 0)
        cols = lax.broadcasted_iota(jnp.int32, (bm, K), 1)
        idx = ((pl.program_id(0) * bm + rows) * K + cols).astype(jnp.uint32)

        # murmur3 fmix32 of (idx ^ seed * golden-ratio)
        h = idx ^ (seed_ref[0].astype(jnp.uint32) * jnp.uint32(_MIX1))
        h = h ^ (h >> 16)
        h = h * jnp.uint32(_MIX2)
        h = h ^ (h >> 13)
        h = h * jnp.uint32(_MIX3)
        h = h ^ (h >> 16)

        keep = h >= jnp.uint32(_threshold_u32(drop))  # P(keep) = 1 - drop, exact
        x = jnp.where(keep, x, jnp.zeros_like(x))

    # x (bm, K) contracted with w (N_pad, K) over K -> (bm, N_pad), f32 accumulate.
    y = lax.dot_general(x, w_ref[...], (((1,), (1,)), ((), ())),
                        preferred_element_type=jnp.float32)

    if drop > 0.0:
        # Inverted-dropout scale, fused with the bias add (bm*N work, not bm*K).
        y = y * jnp.float32(1.0 / (1.0 - drop))

    o_ref[...] = (y + b_ref[...].astype(jnp.float32)).astype(o_ref.dtype)


def linear_block(x, weight, bias, *, drop: float, seed: int = 0):
    """Pallas forward of LinearBlock.

    x:      (B, in_features)
    weight: (out_features, in_features)   (PyTorch nn.Linear layout, NOT transposed)
    bias:   (out_features,)
    """
    B, K = x.shape
    N, K2 = weight.shape
    assert K == K2 and bias.shape == (N,)

    # Lane-dense output: pad out_features up to a multiple of 128 (zero rows of
    # weight / zero bias produce zero padded columns, sliced off afterwards).
    N_pad = ((N + 127) // 128) * 128
    if N_pad != N:
        weight = jnp.pad(weight, ((0, N_pad - N), (0, 0)))
        bias = jnp.pad(bias, (0, N_pad - N))
    b2 = bias.reshape(1, N_pad)
    seed_arr = jnp.array([seed], dtype=jnp.int32)

    # Batch tiling: largest power-of-two tile <= 512 that divides B, else full B.
    bm = B
    for cand in (512, 256, 128, 64, 32, 16, 8):
        if B % cand == 0:
            bm = cand
            break
    grid = (B // bm,)

    kernel = functools.partial(_linear_block_kernel, drop=float(drop))

    out = pl.pallas_call(
        kernel,
        out_shape=jax.ShapeDtypeStruct((B, N_pad), x.dtype),
        grid_spec=pltpu.PrefetchScalarGridSpec(
            num_scalar_prefetch=1,
            grid=grid,
            in_specs=[
                pl.BlockSpec((bm, K), lambda i, seed: (i, 0)),
                pl.BlockSpec((N_pad, K), lambda i, seed: (0, 0)),
                pl.BlockSpec((1, N_pad), lambda i, seed: (0, 0)),
            ],
            out_specs=pl.BlockSpec((bm, N_pad), lambda i, seed: (i, 0)),
        ),
        compiler_params=pltpu.CompilerParams(
            dimension_semantics=("parallel",)),  # batch tiles are independent
    )(seed_arr, x, weight, b2)

    return out[:, :N] if N_pad != N else out


def _dropout_mask_ref(B, K, seed, drop):
    """Pure-JAX mirror of the kernel's hash-based dropout mask (for testing)."""
    rows = jnp.arange(B, dtype=jnp.int32)[:, None]
    cols = jnp.arange(K, dtype=jnp.int32)[None, :]
    idx = (rows * K + cols).astype(jnp.uint32)
    h = idx ^ (jnp.uint32(seed) * jnp.uint32(_MIX1))
    h = h ^ (h >> 16)
    h = h * jnp.uint32(_MIX2)
    h = h ^ (h >> 13)
    h = h * jnp.uint32(_MIX3)
    h = h ^ (h >> 16)
    return h >= jnp.uint32(_threshold_u32(drop))


if __name__ == "__main__":
    # Small shapes consistent with the module: batch=8, in_features=32, out_features=32.
    B, IN_F, OUT_F = 8, 32, 32
    DROP = 0.1
    SEED = 123

    key = jax.random.PRNGKey(0)
    kx, kw, kb = jax.random.split(key, 3)

    # Deterministic PyTorch-style init: U(-1/sqrt(in), 1/sqrt(in)).
    bound = 1.0 / (IN_F ** 0.5)
    x = jax.random.normal(kx, (B, IN_F), dtype=jnp.float32)
    weight = jax.random.uniform(kw, (OUT_F, IN_F), jnp.float32, -bound, bound)
    bias = jax.random.uniform(kb, (OUT_F,), jnp.float32, -bound, bound)

    # 1) Deterministic path (drop=0.0): exact Linear forward.
    y_det = jax.block_until_ready(linear_block(x, weight, bias, drop=0.0))
    y_ref = x @ weight.T + bias
    assert jnp.allclose(y_det, y_ref, atol=1e-5, rtol=1e-5), "drop=0 mismatch"

    # 2) Training-mode dropout path: compare against the same hash mask in pure JAX.
    y_drop = jax.block_until_ready(
        linear_block(x, weight, bias, drop=DROP, seed=SEED))
    mask = _dropout_mask_ref(B, IN_F, SEED, DROP)
    y_drop_ref = (jnp.where(mask, x, 0.0) @ weight.T) / (1.0 - DROP) + bias
    assert y_drop.shape == (B, OUT_F)
    assert jnp.allclose(y_drop, y_drop_ref, atol=1e-4, rtol=1e-5), "dropout mismatch"

    # 3) drop=1.0 edge case: everything dropped -> output equals bias.
    y_all = jax.block_until_ready(linear_block(x, weight, bias, drop=1.0))
    assert jnp.allclose(y_all, jnp.broadcast_to(bias, (B, OUT_F)), atol=1e-6)

    print("KERNEL_OK")
</pallas_src>

<mosaic_0001>
module attributes {stable_mosaic.version = 11 : i64} {
  func.func @_linear_block_kernel(%arg0: i32, %arg1: memref<1xi32, #tpu.memory_space<smem>>, %arg2: memref<8x32xf32, #tpu.memory_space<vmem>>, %arg3: memref<128x32xf32, #tpu.memory_space<vmem>>, %arg4: memref<1x128xf32, #tpu.memory_space<vmem>>, %arg5: memref<8x128xf32, #tpu.memory_space<vmem>>) attributes {dimension_semantics = [#tpu.dimension_semantics<parallel>], iteration_bounds = array<i64: 1>, scalar_prefetch = 1 : i64, scratch_operands = 0 : i64, tpu.core_type = #tpu.core_type<tc>, window_params = [{transform_indices = @transform_0, window_bounds = array<i64: 8, 32>}, {pipeline_mode = #tpu.pipeline_mode<synchronous>, transform_indices = @transform_1, window_bounds = array<i64: 128, 32>}, {pipeline_mode = #tpu.pipeline_mode<synchronous>, transform_indices = @transform_2, window_bounds = array<i64: 1, 128>}, {transform_indices = @transform_3, window_bounds = array<i64: 8, 128>}]} {
    %c0 = arith.constant 0 : index
    %c0_0 = arith.constant 0 : index
    %0 = vector.load %arg2[%c0, %c0_0] : memref<8x32xf32, #tpu.memory_space<vmem>>, vector<8x32xf32>
    %c0_1 = arith.constant 0 : index
    %c0_2 = arith.constant 0 : index
    %1 = vector.load %arg3[%c0_1, %c0_2] : memref<128x32xf32, #tpu.memory_space<vmem>>, vector<128x32xf32>
    %cst = arith.constant dense<0.000000e+00> : vector<8x128xf32>
    %2 = tpu.matmul %0, %1, %cst {dimension_numbers = #tpu.dot_dimension_numbers<[1], [1], [0], [0], [0, 0, 1, 0], [], []>} : vector<8x32xf32>, vector<128x32xf32>, vector<8x128xf32> -> vector<8x128xf32>
    %c0_3 = arith.constant 0 : index
    %c0_4 = arith.constant 0 : index
    %3 = vector.load %arg4[%c0_3, %c0_4] : memref<1x128xf32, #tpu.memory_space<vmem>>, vector<1x128xf32>
    %4 = vector.broadcast %3 : vector<1x128xf32> to vector<8x128xf32>
    %5 = arith.addf %2, %4 : vector<8x128xf32>
    %c0_5 = arith.constant 0 : index
    %c0_6 = arith.constant 0 : index
    %6 = vector.load %arg5[%c0_5, %c0_6] : memref<8x128xf32, #tpu.memory_space<vmem>>, vector<8x128xf32>
    tpu.vector_store %arg5[%c0_5, %c0_6], %5 {strides = array<i32>} : memref<8x128xf32, #tpu.memory_space<vmem>>, vector<8x128xf32>,
    return
  }
  func.func @transform_0(%arg0: i32, %arg1: memref<1xi32, #tpu.memory_space<smem>>) -> (i32, i32) {
    %c0_i32 = arith.constant 0 : i32
    %c0_i32_0 = arith.constant 0 : i32
    return %arg0, %c0_i32 : i32, i32
  }
  func.func @transform_1(%arg0: i32, %arg1: memref<1xi32, #tpu.memory_space<smem>>) -> (i32, i32) {
    %c0_i32 = arith.constant 0 : i32
    %c0_i32_0 = arith.constant 0 : i32
    %c0_i32_1 = arith.constant 0 : i32
    return %c0_i32, %c0_i32_0 : i32, i32
  }
  func.func @transform_2(%arg0: i32, %arg1: memref<1xi32, #tpu.memory_space<smem>>) -> (i32, i32) {
    %c0_i32 = arith.constant 0 : i32
    %c0_i32_0 = arith.constant 0 : i32
    %c0_i32_1 = arith.constant 0 : i32
    return %c0_i32, %c0_i32_0 : i32, i32
  }
  func.func @transform_3(%arg0: i32, %arg1: memref<1xi32, #tpu.memory_space<smem>>) -> (i32, i32) {
    %c0_i32 = arith.constant 0 : i32
    %c0_i32_0 = arith.constant 0 : i32
    return %arg0, %c0_i32 : i32, i32
  }
}

</mosaic_0001>

<bundles_post_ra>
// kernel: tpu_custom_call.1
= control target key start
LH: loop header
LB: loop body
LE: loop exit
PB: predicated region body
PF: predicated region fallthrough
CT: control target
= control target key end

     0   :  { %vm41_vm0 = vcmask 261120   ;;  %v273_v1 = vmov 0.0   ;;  %vm274_vm1 = vmmov 0   ;;  %s375_s0 = inlined_call_operand.<no memory space> [shape: s32[1], index: 0, kind: input, shape index: {}]   ;;  %s376_s1 = inlined_call_operand.vmem [shape: f32[8,32], index: 1, kind: input, shape index: {}]   ;;  %s377_s2 = inlined_call_operand.vmem [shape: f32[128,32], index: 2, kind: input, shape index: {}]   ;;  %s378_s3 = inlined_call_operand.vmem [shape: f32[1,128], index: 3, kind: input, shape index: {}]   ;;  %s379_s4 = inlined_call_operand.hbm [shape: f32[8,128], index: 4, kind: output, shape index: {}]  }
   0x1   :  { %v33_v0 = vld [vmem:[%s377_s2 + $0x78] sm:$0xff]  ;;  %213 = vmatprep.subr.mxu0 %v273_v1  ;;  %245 = vmatprep.mubr.msk.f32.mxu0 %vm274_vm1, %v273_v1  ;;  %v32_v2 = vld [vmem:[%s377_s2 + $0x70] sm:$0xff] }
   0x2   :  { %214 = vmatpush3.xpose.msk.msra.mxu0 %vm41_vm0, %v33_v0 }
   0x3   :  { %215 = vmatprep.subr.mxu0 %v273_v1 }
   0x6   :  { %216 = vmatpush3.xpose.msk.msra.mxu0 %vm41_vm0, %v32_v2 }
   0x7   :  { %10 = vsyncpa [#allocation5], 0  ;;  %217 = vmatprep.subr.mxu0 %v273_v1  ;;  %v31_v3 = vld [vmem:[%s377_s2 + $0x68] sm:$0xff]  ;;  %v30_v4 = vld [vmem:[%s377_s2 + $0x60] sm:$0xff]  ;;  %s275_s23 = smov [#allocation4]  }
   0x8   :  { %v29_v5 = vld [vmem:[%s377_s2 + $0x58] sm:$0xff]  ;;  %v28_v6 = vld [vmem:[%s377_s2 + $0x50] sm:$0xff]  ;;  %v27_v7 = vld [vmem:[%s377_s2 + $0x48] sm:$0xff]  ;;  %s170_s24 = sshll.u32 %s275_s23, 4  ;;  %s171_s24 = int_to_ptr.vmem [resolvable:$true] %s170_s24 }
   0x9   :  { %v26_v8 = vld [vmem:[%s377_s2 + $0x40] sm:$0xff]  ;;  %v25_v9 = vld [vmem:[%s377_s2 + $0x38] sm:$0xff]  ;;  %v24_v10 = vld [vmem:[%s377_s2 + $0x30] sm:$0xff]  ;;  %p256_p1 = scmp.lt.s32.totalorder %s171_s24, %s171_s24 }
   0xa   :  { %218 = vmatpush3.xpose.msk.msra.mxu0 %vm41_vm0, %v31_v3  ;;  %v23_v11 = vld [vmem:[%s377_s2 + $0x28] sm:$0xff]  ;;  %v22_v12 = vld [vmem:[%s377_s2 + $0x20] sm:$0xff]  ;;  %v21_v13 = vld [vmem:[%s377_s2 + $0x18] sm:$0xff] }
   0xb   :  { %219 = vmatprep.subr.mxu0 %v273_v1  ;;  %v20_v14 = vld [vmem:[%s377_s2 + $0x10] sm:$0xff]  ;;  %v19_v15 = vld [vmem:[%s377_s2 + $0x8] sm:$0xff]  ;;  %v18_v16 = vld [vmem:[%s377_s2] sm:$0xff]  ;;  %s251_s2 = scalar_lea.vmem %s171_s24, 128 }
   0xc   :  { %v17_v17 = vld [vmem:[%s376_s1] sm:$0xff]  ;;  %p252_p0 = scmp.ne.s32.totalorder %s171_s24, %s251_s2  ;;  %p257_p2 = scmp.lt.s32.totalorder %s251_s2, %s251_s2 }
   0xd   :  { %v178_v18 = vld [vmem:[%s378_s3] ss:$0 sm:$0xff] }
   0xe   :  { %220 = vmatpush3.xpose.msk.msra.mxu0 %vm41_vm0, %v30_v4  ;;  %p258_p3 = por %p257_p2, %p256_p1 }
   0xf   :  { %221 = vmatprep.subr.mxu0 %v273_v1 }
  0x10   :  { %p259_p4 = pnand %p258_p3, %p252_p0 }
  0x12   :  { %222 = vmatpush3.xpose.msk.msra.mxu0 %vm41_vm0, %v29_v5 }
  0x13   :  { %223 = vmatprep.subr.mxu0 %v273_v1 }
  0x16   :  { %224 = vmatpush3.xpose.msk.msra.mxu0 %vm41_vm0, %v28_v6 }
  0x17   :  { %225 = vmatprep.subr.mxu0 %v273_v1 }
  0x1a   :  { %226 = vmatpush3.xpose.msk.msra.mxu0 %vm41_vm0, %v27_v7 }
  0x1b   :  { %227 = vmatprep.subr.mxu0 %v273_v1 }
  0x1e   :  { %228 = vmatpush3.xpose.msk.msra.mxu0 %vm41_vm0, %v26_v8 }
  0x1f   :  { %229 = vmatprep.subr.mxu0 %v273_v1 }
  0x22   :  { %230 = vmatpush3.xpose.msk.msra.mxu0 %vm41_vm0, %v25_v9 }
  0x23   :  { %231 = vmatprep.subr.mxu0 %v273_v1 }
  0x26   :  { %232 = vmatpush3.xpose.msk.msra.mxu0 %vm41_vm0, %v24_v10 }
  0x27   :  { %233 = vmatprep.subr.mxu0 %v273_v1 }
  0x2a   :  { %234 = vmatpush3.xpose.msk.msra.mxu0 %vm41_vm0, %v23_v11 }
  0x2b   :  { %235 = vmatprep.subr.mxu0 %v273_v1 }
  0x2e   :  { %236 = vmatpush3.xpose.msk.msra.mxu0 %vm41_vm0, %v22_v12 }
  0x2f   :  { %237 = vmatprep.subr.mxu0 %v273_v1 }
  0x32   :  { %238 = vmatpush3.xpose.msk.msra.mxu0 %vm41_vm0, %v21_v13 }
  0x33   :  { %239 = vmatprep.subr.mxu0 %v273_v1 }
  0x36   :  { %240 = vmatpush3.xpose.msk.msra.mxu0 %vm41_vm0, %v20_v14 }
  0x37   :  { %241 = vmatprep.subr.mxu0 %v273_v1 }
  0x3a   :  { %242 = vmatpush3.xpose.msk.msra.mxu0 %vm41_vm0, %v19_v15 }
  0x3b   :  { %243 = vmatprep.subr.mxu0 %v273_v1 }
  0x3e   :  { %244 = vmatpush3.xpose.msk.msra.mxu0 %vm41_vm0, %v18_v16 }
  0x41   :  { %246 = vmatmul.mubr.msk.f32.vlgmr.msra.gmra.mxu0 %vm41_vm0, %v17_v17 }
 0x101   :  { %v159_v19 = vpop.f32.mrf.mxu0 }
 0x102   :  { %v160_v20 = vadd.f32 %v178_v18, %v159_v19 }
 0x103   :  { %v247_v21 = vpop.f32.mrf.mxu0 }
 0x104   :  { %163 = vst [vmem:[#allocation4] sm:$0xff] %v160_v20 }
 0x105   :  { %262 = shalt.err (!%p259_p4)
}
 0x106   :  { %173 = dma.vmem_to_hbm [thread:$0]  %s171_s24, 128, %s379_s4, [#allocation5]  }
 0x107   :  { %271 = dma.done.wait [#allocation5], 128  }
 0x108   :  { %272 = vsyncadd [#allocation5], 4294967168 }
 0x109   :  { %177 = vsyncpa [#allocation5], 1 }

</bundles_post_ra>
